<compile_context>
chip_gen: v7x
topology: tpu7x:2x2x1
jax: 0.10.0
libtpu: 0.0.40
codegen_flags: <defaults>
</compile_context>

<pallas_src>
from functools import partial

import jax
import jax.numpy as jnp
from jax.experimental import pallas as pl
from jax.experimental.pallas import tpu as pltpu


def _round_up(n, m):
    return ((n + m - 1) // m) * m


# --------------------------------------------------------------------------- #
# Kernel
# --------------------------------------------------------------------------- #
def _mlp_kernel(x_ref, w1, b1, w2, b2, whh, bhh, w5, b5, o_ref):
    def lin(h, w, b):
        # MXU in bf16 (weights already bf16), accumulate in f32; bias/ReLU/
        # residual stay f32 on the VPU.
        return jnp.dot(h.astype(jnp.bfloat16), w,
                       preferred_element_type=jnp.float32) + b

    h = jnp.maximum(lin(x_ref[...], w1[...], b1[...]), 0.0)   # linear1: 5 -> 64
    h = jnp.maximum(lin(h, w2[...], b2[...]), 0.0)            # linear2: 64 -> H
    h = jnp.maximum(lin(h, whh[0], bhh[0]), 0.0) + h          # linear3 + residual
    h = jnp.maximum(lin(h, whh[1], bhh[1]), 0.0) + h          # linear4 + residual
    h = jnp.maximum(lin(h, whh[2], bhh[2]), 0.0)              # conv1 (nn.Linear)
    h = jnp.maximum(lin(h, whh[3], bhh[3]), 0.0)              # conv2 (nn.Linear)
    o_ref[...] = lin(h, w5[...], b5[...])                     # linear5 (lane-padded)


# --------------------------------------------------------------------------- #
# Parameter packing (done ONCE, outside the forward path)
# --------------------------------------------------------------------------- #
def pack_params(params):
    """Pack raw (w,b) pairs into the kernel operand layout.

    Returns (packed_tuple, out_dim). Weights are bf16, biases stay f32.
    """
    (w1, b1, w2, b2, w3, b3, w4, b4, wc1, bc1, wc2, bc2, w5, b5) = params
    H = w2.shape[1]
    out_dim = w5.shape[1]                                      # 60
    out_pad = _round_up(out_dim, 128)                          # lane-dense output

    bf16 = jnp.bfloat16
    w5p = jnp.zeros((H, out_pad), bf16).at[:, :out_dim].set(w5.astype(bf16))
    b5p = jnp.zeros((1, out_pad), jnp.float32).at[:, :out_dim].set(b5)
    whh = jnp.stack([w3, w4, wc1, wc2]).astype(bf16)           # (4, H, H)
    bhh = jnp.stack([b3, b4, bc1, bc2]).astype(jnp.float32)    # (4, 1, H)

    packed = (w1.astype(bf16), b1.astype(jnp.float32),
              w2.astype(bf16), b2.astype(jnp.float32),
              whh, bhh, w5p, b5p)
    return packed, out_dim


# --------------------------------------------------------------------------- #
# Forward
# --------------------------------------------------------------------------- #
@partial(jax.jit, static_argnames=("out_dim", "max_tm"))
def _forward(x, w1, b1, w2, b2, whh, bhh, w5p, b5p, *, out_dim, max_tm):
    N, F = x.shape
    H = w2.shape[1]
    out_pad = w5p.shape[1]

    # ---- row tile: big enough to amortize per-step overhead, >=2 steps for
    # ---- v7x megacore once there is real work to split.
    max_tm = max(8, _round_up(max_tm, 8))
    if N >= 2 * max_tm:
        tm = max_tm
    elif N >= 1024:
        tm = _round_up(pl.cdiv(N, 2), 8)
    else:
        tm = min(N, max_tm)            # single full-extent block (no padding)
    grid = (pl.cdiv(N, tm),)

    # ---- specs ------------------------------------------------------------
    def full_spec(p):
        nd = p.ndim
        return pl.BlockSpec(tuple(p.shape), lambda i, _nd=nd: (0,) * _nd)

    in_specs = [pl.BlockSpec((tm, F), lambda i: (i, 0))]
    in_specs += [full_spec(p) for p in (w1, b1, w2, b2, whh, bhh, w5p, b5p)]
    out_spec = pl.BlockSpec((tm, out_pad), lambda i: (i, 0))

    # ---- cost / VMEM hints --------------------------------------------------
    weight_bytes = sum(int(a.size) * a.dtype.itemsize
                       for a in (w1, b1, w2, b2, whh, bhh, w5p, b5p))
    flops = int(2 * N * (F * 64 + 64 * H + 4 * H * H + H * out_pad))
    bytes_accessed = int(N * (F * 4 + out_pad * 4) + weight_bytes)
    cost = pl.CostEstimate(flops=flops, transcendentals=0,
                           bytes_accessed=bytes_accessed)

    act_tile_bytes = tm * 128 * 4                     # one f32 activation tile
    vmem_budget = (4 * act_tile_bytes                 # x + out, double-buffered
                   + 2 * weight_bytes                 # resident weights/biases
                   + 6 * act_tile_bytes)              # live intermediates
    vmem_limit = int(min(max(2 * vmem_budget, 16 * 1024 * 1024),
                         64 * 1024 * 1024))           # <= v7x physical VMEM

    out = pl.pallas_call(
        _mlp_kernel,
        out_shape=jax.ShapeDtypeStruct((N, out_pad), jnp.float32),
        grid=grid,
        in_specs=in_specs,
        out_specs=out_spec,
        compiler_params=pltpu.CompilerParams(
            dimension_semantics=("parallel",),
            vmem_limit_bytes=vmem_limit),
        cost_estimate=cost,
    )(x, w1, b1, w2, b2, whh, bhh, w5p, b5p)

    # Lane slice only (rows were never padded).  If the consumer can index
    # lanes 0:out_dim itself, return `out` directly to skip this copy.
    return out[:, :out_dim]


def gnn_mtl_mlp_forward(x, edge_index, packed_params, out_dim, *, max_tm=2048):
    """Forward pass. edge_index is accepted for interface parity but unused,
    matching the PyTorch forward (conv1/conv2 are plain Linear layers)."""
    del edge_index
    return _forward(x, *packed_params, out_dim=out_dim, max_tm=max_tm)


# --------------------------------------------------------------------------- #
# Reference + synthetic params
# --------------------------------------------------------------------------- #
def init_params(hidden_channels, key):
    """Deterministic synthetic parameters (shapes match the torch module)."""
    dims = [
        (5, 64),                               # linear1
        (64, hidden_channels),                 # linear2
        (hidden_channels, hidden_channels),    # linear3
        (hidden_channels, hidden_channels),    # linear4
        (hidden_channels, hidden_channels),    # conv1 (nn.Linear)
        (hidden_channels, hidden_channels),    # conv2 (nn.Linear)
        (hidden_channels, 30 * 2),             # linear5
    ]
    params = []
    for (fan_in, fan_out) in dims:
        key, kw, kb = jax.random.split(key, 3)
        bound = 1.0 / jnp.sqrt(fan_in)
        w = jax.random.uniform(kw, (fan_in, fan_out), jnp.float32, -bound, bound)
        b = jax.random.uniform(kb, (1, fan_out), jnp.float32, -bound, bound)
        params += [w, b]
    return params


def reference_forward(x, params, *, emulate_bf16=False):
    ws = params[0::2]
    bs = params[1::2]

    def mm(a, w):
        if emulate_bf16:
            return jnp.dot(a.astype(jnp.bfloat16), w.astype(jnp.bfloat16),
                           preferred_element_type=jnp.float32)
        return a @ w

    h = jnp.maximum(mm(x, ws[0]) + bs[0], 0.0)
    h = jnp.maximum(mm(h, ws[1]) + bs[1], 0.0)
    h = jnp.maximum(mm(h, ws[2]) + bs[2], 0.0) + h
    h = jnp.maximum(mm(h, ws[3]) + bs[3], 0.0) + h
    h = jnp.maximum(mm(h, ws[4]) + bs[4], 0.0)
    h = jnp.maximum(mm(h, ws[5]) + bs[5], 0.0)
    return mm(h, ws[6]) + bs[6]


if __name__ == "__main__":
    hidden_channels = 32
    num_nodes = 64

    key = jax.random.PRNGKey(0)
    key, kx, ke = jax.random.split(key, 3)

    # x: per-node 5-dim input features; edge_index: unused graph connectivity.
    x = jax.random.normal(kx, (num_nodes, 5), jnp.float32)
    edge_index = jax.random.randint(ke, (2, 128), 0, num_nodes, jnp.int32)

    raw_params = init_params(hidden_channels, jax.random.PRNGKey(21))
    packed_params, out_dim = pack_params(raw_params)   # one-time packing

    out = gnn_mtl_mlp_forward(x, edge_index, packed_params, out_dim)
    out = jax.block_until_ready(out)
    assert out.shape == (num_nodes, 60)

    # Exact-math check against a reference that uses the same bf16 MXU inputs.
    ref_bf16 = reference_forward(x, raw_params, emulate_bf16=True)
    assert jnp.allclose(out, ref_bf16, atol=2e-3, rtol=2e-3)
    # Semantics check against the pure-f32 module (loose: bf16 quantization).
    ref_f32 = reference_forward(x, raw_params, emulate_bf16=False)
    assert jnp.allclose(out, ref_f32, atol=5e-2, rtol=5e-2)

    # Ragged row count (exercises the full-extent / no-padding path).
    x2 = jax.random.normal(kx, (50, 5), jnp.float32)
    out2 = jax.block_until_ready(
        gnn_mtl_mlp_forward(x2, edge_index, packed_params, out_dim))
    assert out2.shape == (50, 60)
    ref2_bf16 = reference_forward(x2, raw_params, emulate_bf16=True)
    ref2_f32 = reference_forward(x2, raw_params, emulate_bf16=False)
    assert jnp.allclose(out2, ref2_bf16, atol=2e-3, rtol=2e-3)
    assert jnp.allclose(out2, ref2_f32, atol=5e-2, rtol=5e-2)

    print("KERNEL_OK")
</pallas_src>

<mosaic_0001>
module attributes {stable_mosaic.version = 11 : i64} {
  func.func @_mlp_kernel(%arg0: i32, %arg1: memref<64x5xf32, #tpu.memory_space<vmem>>, %arg2: memref<5x64xbf16, #tpu.memory_space<vmem>>, %arg3: memref<1x64xf32, #tpu.memory_space<vmem>>, %arg4: memref<64x32xbf16, #tpu.memory_space<vmem>>, %arg5: memref<1x32xf32, #tpu.memory_space<vmem>>, %arg6: memref<4x32x32xbf16, #tpu.memory_space<vmem>>, %arg7: memref<4x1x32xf32, #tpu.memory_space<vmem>>, %arg8: memref<32x128xbf16, #tpu.memory_space<vmem>>, %arg9: memref<1x128xf32, #tpu.memory_space<vmem>>, %arg10: memref<64x128xf32, #tpu.memory_space<vmem>>) attributes {dimension_semantics = [#tpu.dimension_semantics<parallel>], iteration_bounds = array<i64: 1>, scalar_prefetch = 0 : i64, scratch_operands = 0 : i64, tpu.core_type = #tpu.core_type<tc>, window_params = [{transform_indices = @transform_0, window_bounds = array<i64: 64, 5>}, {pipeline_mode = #tpu.pipeline_mode<synchronous>, transform_indices = @transform_1, window_bounds = array<i64: 5, 64>}, {pipeline_mode = #tpu.pipeline_mode<synchronous>, transform_indices = @transform_2, window_bounds = array<i64: 1, 64>}, {pipeline_mode = #tpu.pipeline_mode<synchronous>, transform_indices = @transform_3, window_bounds = array<i64: 64, 32>}, {pipeline_mode = #tpu.pipeline_mode<synchronous>, transform_indices = @transform_4, window_bounds = array<i64: 1, 32>}, {pipeline_mode = #tpu.pipeline_mode<synchronous>, transform_indices = @transform_5, window_bounds = array<i64: 4, 32, 32>}, {pipeline_mode = #tpu.pipeline_mode<synchronous>, transform_indices = @transform_6, window_bounds = array<i64: 4, 1, 32>}, {pipeline_mode = #tpu.pipeline_mode<synchronous>, transform_indices = @transform_7, window_bounds = array<i64: 32, 128>}, {pipeline_mode = #tpu.pipeline_mode<synchronous>, transform_indices = @transform_8, window_bounds = array<i64: 1, 128>}, {transform_indices = @transform_9, window_bounds = array<i64: 64, 128>}]} {
    %c0 = arith.constant 0 : index
    %c0_0 = arith.constant 0 : index
    %0 = vector.load %arg1[%c0, %c0_0] : memref<64x5xf32, #tpu.memory_space<vmem>>, vector<64x5xf32>
    %c0_1 = arith.constant 0 : index
    %c0_2 = arith.constant 0 : index
    %1 = vector.load %arg2[%c0_1, %c0_2] : memref<5x64xbf16, #tpu.memory_space<vmem>>, vector<5x64xbf16>
    %c0_3 = arith.constant 0 : index
    %c0_4 = arith.constant 0 : index
    %2 = vector.load %arg3[%c0_3, %c0_4] : memref<1x64xf32, #tpu.memory_space<vmem>>, vector<1x64xf32>
    %3 = arith.truncf %0 : vector<64x5xf32> to vector<64x5xbf16>
    %cst = arith.constant dense<0.000000e+00> : vector<64x64xf32>
    %4 = tpu.matmul %3, %1, %cst {dimension_numbers = #tpu.dot_dimension_numbers<[1], [0], [0], [1], [0, 0, 1, 1], [], []>} : vector<64x5xbf16>, vector<5x64xbf16>, vector<64x64xf32> -> vector<64x64xf32>
    %5 = vector.broadcast %2 : vector<1x64xf32> to vector<64x64xf32>
    %6 = arith.addf %4, %5 : vector<64x64xf32>
    %cst_5 = arith.constant 0.000000e+00 : f32
    %7 = vector.broadcast %cst_5 : f32 to vector<64x64xf32>
    %8 = arith.maximumf %6, %7 : vector<64x64xf32>
    %c0_6 = arith.constant 0 : index
    %c0_7 = arith.constant 0 : index
    %9 = vector.load %arg4[%c0_6, %c0_7] : memref<64x32xbf16, #tpu.memory_space<vmem>>, vector<64x32xbf16>
    %c0_8 = arith.constant 0 : index
    %c0_9 = arith.constant 0 : index
    %10 = vector.load %arg5[%c0_8, %c0_9] : memref<1x32xf32, #tpu.memory_space<vmem>>, vector<1x32xf32>
    %11 = arith.truncf %8 : vector<64x64xf32> to vector<64x64xbf16>
    %cst_10 = arith.constant dense<0.000000e+00> : vector<64x32xf32>
    %12 = tpu.matmul %11, %9, %cst_10 {dimension_numbers = #tpu.dot_dimension_numbers<[1], [0], [0], [1], [0, 0, 1, 1], [], []>} : vector<64x64xbf16>, vector<64x32xbf16>, vector<64x32xf32> -> vector<64x32xf32>
    %13 = vector.broadcast %10 : vector<1x32xf32> to vector<64x32xf32>
    %14 = arith.addf %12, %13 : vector<64x32xf32>
    %cst_11 = arith.constant 0.000000e+00 : f32
    %15 = vector.broadcast %cst_11 : f32 to vector<64x32xf32>
    %16 = arith.maximumf %14, %15 : vector<64x32xf32>
    %c0_12 = arith.constant 0 : index
    %c0_13 = arith.constant 0 : index
    %c0_14 = arith.constant 0 : index
    %17 = vector.load %arg6[%c0_12, %c0_13, %c0_14] : memref<4x32x32xbf16, #tpu.memory_space<vmem>>, vector<1x32x32xbf16>
    %18 = vector.shape_cast %17 : vector<1x32x32xbf16> to vector<32x32xbf16>
    %c0_15 = arith.constant 0 : index
    %c0_16 = arith.constant 0 : index
    %c0_17 = arith.constant 0 : index
    %19 = vector.load %arg7[%c0_15, %c0_16, %c0_17] : memref<4x1x32xf32, #tpu.memory_space<vmem>>, vector<1x1x32xf32>
    %20 = vector.shape_cast %19 : vector<1x1x32xf32> to vector<1x32xf32>
    %21 = arith.truncf %16 : vector<64x32xf32> to vector<64x32xbf16>
    %cst_18 = arith.constant dense<0.000000e+00> : vector<64x32xf32>
    %22 = tpu.matmul %21, %18, %cst_18 {dimension_numbers = #tpu.dot_dimension_numbers<[1], [0], [0], [1], [0, 0, 1, 1], [], []>} : vector<64x32xbf16>, vector<32x32xbf16>, vector<64x32xf32> -> vector<64x32xf32>
    %23 = vector.broadcast %20 : vector<1x32xf32> to vector<64x32xf32>
    %24 = arith.addf %22, %23 : vector<64x32xf32>
    %cst_19 = arith.constant 0.000000e+00 : f32
    %25 = vector.broadcast %cst_19 : f32 to vector<64x32xf32>
    %26 = arith.maximumf %24, %25 : vector<64x32xf32>
    %27 = arith.addf %26, %16 : vector<64x32xf32>
    %c1 = arith.constant 1 : index
    %c0_20 = arith.constant 0 : index
    %c0_21 = arith.constant 0 : index
    %28 = vector.load %arg6[%c1, %c0_20, %c0_21] : memref<4x32x32xbf16, #tpu.memory_space<vmem>>, vector<1x32x32xbf16>
    %29 = vector.shape_cast %28 : vector<1x32x32xbf16> to vector<32x32xbf16>
    %c1_22 = arith.constant 1 : index
    %c0_23 = arith.constant 0 : index
    %c0_24 = arith.constant 0 : index
    %30 = vector.load %arg7[%c1_22, %c0_23, %c0_24] : memref<4x1x32xf32, #tpu.memory_space<vmem>>, vector<1x1x32xf32>
    %31 = vector.shape_cast %30 : vector<1x1x32xf32> to vector<1x32xf32>
    %32 = arith.truncf %27 : vector<64x32xf32> to vector<64x32xbf16>
    %cst_25 = arith.constant dense<0.000000e+00> : vector<64x32xf32>
    %33 = tpu.matmul %32, %29, %cst_25 {dimension_numbers = #tpu.dot_dimension_numbers<[1], [0], [0], [1], [0, 0, 1, 1], [], []>} : vector<64x32xbf16>, vector<32x32xbf16>, vector<64x32xf32> -> vector<64x32xf32>
    %34 = vector.broadcast %31 : vector<1x32xf32> to vector<64x32xf32>
    %35 = arith.addf %33, %34 : vector<64x32xf32>
    %cst_26 = arith.constant 0.000000e+00 : f32
    %36 = vector.broadcast %cst_26 : f32 to vector<64x32xf32>
    %37 = arith.maximumf %35, %36 : vector<64x32xf32>
    %38 = arith.addf %37, %27 : vector<64x32xf32>
    %c2 = arith.constant 2 : index
    %c0_27 = arith.constant 0 : index
    %c0_28 = arith.constant 0 : index
    %39 = vector.load %arg6[%c2, %c0_27, %c0_28] : memref<4x32x32xbf16, #tpu.memory_space<vmem>>, vector<1x32x32xbf16>
    %40 = vector.shape_cast %39 : vector<1x32x32xbf16> to vector<32x32xbf16>
    %c2_29 = arith.constant 2 : index
    %c0_30 = arith.constant 0 : index
    %c0_31 = arith.constant 0 : index
    %41 = vector.load %arg7[%c2_29, %c0_30, %c0_31] : memref<4x1x32xf32, #tpu.memory_space<vmem>>, vector<1x1x32xf32>
    %42 = vector.shape_cast %41 : vector<1x1x32xf32> to vector<1x32xf32>
    %43 = arith.truncf %38 : vector<64x32xf32> to vector<64x32xbf16>
    %cst_32 = arith.constant dense<0.000000e+00> : vector<64x32xf32>
    %44 = tpu.matmul %43, %40, %cst_32 {dimension_numbers = #tpu.dot_dimension_numbers<[1], [0], [0], [1], [0, 0, 1, 1], [], []>} : vector<64x32xbf16>, vector<32x32xbf16>, vector<64x32xf32> -> vector<64x32xf32>
    %45 = vector.broadcast %42 : vector<1x32xf32> to vector<64x32xf32>
    %46 = arith.addf %44, %45 : vector<64x32xf32>
    %cst_33 = arith.constant 0.000000e+00 : f32
    %47 = vector.broadcast %cst_33 : f32 to vector<64x32xf32>
    %48 = arith.maximumf %46, %47 : vector<64x32xf32>
    %c3 = arith.constant 3 : index
    %c0_34 = arith.constant 0 : index
    %c0_35 = arith.constant 0 : index
    %49 = vector.load %arg6[%c3, %c0_34, %c0_35] : memref<4x32x32xbf16, #tpu.memory_space<vmem>>, vector<1x32x32xbf16>
    %50 = vector.shape_cast %49 : vector<1x32x32xbf16> to vector<32x32xbf16>
    %c3_36 = arith.constant 3 : index
    %c0_37 = arith.constant 0 : index
    %c0_38 = arith.constant 0 : index
    %51 = vector.load %arg7[%c3_36, %c0_37, %c0_38] : memref<4x1x32xf32, #tpu.memory_space<vmem>>, vector<1x1x32xf32>
    %52 = vector.shape_cast %51 : vector<1x1x32xf32> to vector<1x32xf32>
    %53 = arith.truncf %48 : vector<64x32xf32> to vector<64x32xbf16>
    %cst_39 = arith.constant dense<0.000000e+00> : vector<64x32xf32>
    %54 = tpu.matmul %53, %50, %cst_39 {dimension_numbers = #tpu.dot_dimension_numbers<[1], [0], [0], [1], [0, 0, 1, 1], [], []>} : vector<64x32xbf16>, vector<32x32xbf16>, vector<64x32xf32> -> vector<64x32xf32>
    %55 = vector.broadcast %52 : vector<1x32xf32> to vector<64x32xf32>
    %56 = arith.addf %54, %55 : vector<64x32xf32>
    %cst_40 = arith.constant 0.000000e+00 : f32
    %57 = vector.broadcast %cst_40 : f32 to vector<64x32xf32>
    %58 = arith.maximumf %56, %57 : vector<64x32xf32>
    %c0_41 = arith.constant 0 : index
    %c0_42 = arith.constant 0 : index
    %59 = vector.load %arg8[%c0_41, %c0_42] : memref<32x128xbf16, #tpu.memory_space<vmem>>, vector<32x128xbf16>
    %c0_43 = arith.constant 0 : index
    %c0_44 = arith.constant 0 : index
    %60 = vector.load %arg9[%c0_43, %c0_44] : memref<1x128xf32, #tpu.memory_space<vmem>>, vector<1x128xf32>
    %61 = arith.truncf %58 : vector<64x32xf32> to vector<64x32xbf16>
    %cst_45 = arith.constant dense<0.000000e+00> : vector<64x128xf32>
    %62 = tpu.matmul %61, %59, %cst_45 {dimension_numbers = #tpu.dot_dimension_numbers<[1], [0], [0], [1], [0, 0, 1, 1], [], []>} : vector<64x32xbf16>, vector<32x128xbf16>, vector<64x128xf32> -> vector<64x128xf32>
    %63 = vector.broadcast %60 : vector<1x128xf32> to vector<64x128xf32>
    %64 = arith.addf %62, %63 : vector<64x128xf32>
    %c0_46 = arith.constant 0 : index
    %c0_47 = arith.constant 0 : index
    %65 = vector.load %arg10[%c0_46, %c0_47] : memref<64x128xf32, #tpu.memory_space<vmem>>, vector<64x128xf32>
    tpu.vector_store %arg10[%c0_46, %c0_47], %64 {strides = array<i32>} : memref<64x128xf32, #tpu.memory_space<vmem>>, vector<64x128xf32>,
    return
  }
  func.func @transform_0(%arg0: i32) -> (i32, i32) {
    %c0_i32 = arith.constant 0 : i32
    %c0_i32_0 = arith.constant 0 : i32
    return %arg0, %c0_i32 : i32, i32
  }
  func.func @transform_1(%arg0: i32) -> (i32, i32) {
    %c0_i32 = arith.constant 0 : i32
    %c0_i32_0 = arith.constant 0 : i32
    %c0_i32_1 = arith.constant 0 : i32
    return %c0_i32, %c0_i32_0 : i32, i32
  }
  func.func @transform_2(%arg0: i32) -> (i32, i32) {
    %c0_i32 = arith.constant 0 : i32
    %c0_i32_0 = arith.constant 0 : i32
    %c0_i32_1 = arith.constant 0 : i32
    return %c0_i32, %c0_i32_0 : i32, i32
  }
  func.func @transform_3(%arg0: i32) -> (i32, i32) {
    %c0_i32 = arith.constant 0 : i32
    %c0_i32_0 = arith.constant 0 : i32
    %c0_i32_1 = arith.constant 0 : i32
    return %c0_i32, %c0_i32_0 : i32, i32
  }
  func.func @transform_4(%arg0: i32) -> (i32, i32) {
    %c0_i32 = arith.constant 0 : i32
    %c0_i32_0 = arith.constant 0 : i32
    %c0_i32_1 = arith.constant 0 : i32
    return %c0_i32, %c0_i32_0 : i32, i32
  }
  func.func @transform_5(%arg0: i32) -> (i32, i32, i32) {
    %c0_i32 = arith.constant 0 : i32
    %c0_i32_0 = arith.constant 0 : i32
    %c0_i32_1 = arith.constant 0 : i32
    %c0_i32_2 = arith.constant 0 : i32
    return %c0_i32, %c0_i32_0, %c0_i32_1 : i32, i32, i32
  }
  func.func @transform_6(%arg0: i32) -> (i32, i32, i32) {
    %c0_i32 = arith.constant 0 : i32
    %c0_i32_0 = arith.constant 0 : i32
    %c0_i32_1 = arith.constant 0 : i32
    %c0_i32_2 = arith.constant 0 : i32
    return %c0_i32, %c0_i32_0, %c0_i32_1 : i32, i32, i32
  }
  func.func @transform_7(%arg0: i32) -> (i32, i32) {
    %c0_i32 = arith.constant 0 : i32
    %c0_i32_0 = arith.constant 0 : i32
    %c0_i32_1 = arith.constant 0 : i32
    return %c0_i32, %c0_i32_0 : i32, i32
  }
  func.func @transform_8(%arg0: i32) -> (i32, i32) {
    %c0_i32 = arith.constant 0 : i32
    %c0_i32_0 = arith.constant 0 : i32
    %c0_i32_1 = arith.constant 0 : i32
    return %c0_i32, %c0_i32_0 : i32, i32
  }
  func.func @transform_9(%arg0: i32) -> (i32, i32) {
    %c0_i32 = arith.constant 0 : i32
    %c0_i32_0 = arith.constant 0 : i32
    return %arg0, %c0_i32 : i32, i32
  }
}

</mosaic_0001>

<bundles_post_ra>
// kernel: _forward.1
= control target key start
LH: loop header
LB: loop body
LE: loop exit
PB: predicated region body
PF: predicated region fallthrough
CT: control target
= control target key end

     0   :  { %vm67_vm0 = vcmask 1041408   ;;  %vm68_vm1 = vcmask 1042432   ;;  %v1110_v2 = vmov 65535   ;;  %vm54_vm2 = vcmask 39936   ;;  %s1294_s0 = inlined_call_operand.vmem [shape: f32[64,5], index: 0, kind: input, shape index: {}]   ;;  %s1295_s1 = inlined_call_operand.vmem [shape: bf16[5,64], index: 1, kind: input, shape index: {}]   ;;  %s1296_s2 = inlined_call_operand.vmem [shape: f32[1,64], index: 2, kind: input, shape index: {}]   ;;  %s1297_s3 = inlined_call_operand.vmem [shape: bf16[64,32], index: 3, kind: input, shape index: {}]   ;;  %s1298_s4 = inlined_call_operand.vmem [shape: f32[1,32], index: 4, kind: input, shape index: {}]   ;;  %s1299_s5 = inlined_call_operand.vmem [shape: bf16[4,32,32], index: 5, kind: input, shape index: {}]   ;;  %s1300_s6 = inlined_call_operand.vmem [shape: f32[4,1,32], index: 6, kind: input, shape index: {}]   ;;  %s1301_s7 = inlined_call_operand.vmem [shape: bf16[32,128], index: 7, kind: input, shape index: {}]   ;;  %s1302_s8 = inlined_call_operand.vmem [shape: f32[1,128], index: 8, kind: input, shape index: {}]   ;;  %s1303_s9 = inlined_call_operand.hbm [shape: f32[64,128], index: 9, kind: output, shape index: {}]  }
   0x1   :  { %v42_v0 = vld [vmem:[%s1295_s1] sm:$0x7]  ;;  %v69_v3 = vsel %vm67_vm0, 4294967295, %v1110_v2  ;;  %v35_v4 = vld [vmem:[%s1294_s0 + $0x8] sm:$0xff]  ;;  %v36_v7 = vld [vmem:[%s1294_s0 + $0x10] sm:$0xff] }
   0x2   :  { %v34_v1 = vld [vmem:[%s1294_s0] sm:$0xff]  ;;  %v70_v5 = vsel %vm68_vm1, %v69_v3, 0  ;;  %v37_v8 = vld [vmem:[%s1294_s0 + $0x18] sm:$0xff]  ;;  %v39_v11 = vld [vmem:[%s1294_s0 + $0x28] sm:$0xff] }
   0x3   :  { %v44_v6 = vpack.c.bf16 %v35_v4, %v34_v1  ;;  %v38_v9 = vld [vmem:[%s1294_s0 + $0x20] sm:$0xff]  ;;  %v72_v10 = vand.u32 %v70_v5, %v42_v0  ;;  %v45_v13 = vpack.c.bf16 %v37_v8, %v36_v7  ;;  %v1073_v14 = vld [vmem:[%s1297_s3 + $0x8] sm:$0xff]   ;;  %v40_v16 = vld [vmem:[%s1294_s0 + $0x30] sm:$0xff] }
   0x4   :  { %v1072_v12 = vld [vmem:[%s1297_s3] sm:$0xff]   ;;  %v46_v15 = vpack.c.bf16 %v39_v11, %v38_v9  ;;  %v41_v17 = vld [vmem:[%s1294_s0 + $0x38] sm:$0xff] }
   0x5   :  { %984 = vmatprep.mubr.msk.bf16.mxu0 %vm54_vm2, %v44_v6  ;;  %982 = vmatprep.subr.bf16.mxu0 %v72_v10  ;;  %v47_v18 = vpack.c.bf16 %v41_v17, %v40_v16 }
   0x6   :  { %983 = vmatpush3.bf16.msra.mxu0 %v72_v10  ;;  %992 = vmatprep.subr.bf16.mxu1 %v1072_v12 }
   0x7   :  { %993 = vmatpush3.bf16.msra.mxu1 %v1072_v12 }
   0x8   :  { %994 = vmatprep.subr.bf16.mxu1 %v1073_v14 }
   0x9   :  { %985 = vmatmul.mubr.msk.bf16.vlgmr.msra.gmra.mrb[0].mxu0 %vm54_vm2, %v45_v13 }
   0xa   :  { %988 = vmatprep.mubr.msk.bf16.mxu0 %vm54_vm2, %v46_v15 }
   0xb   :  { %995 = vmatpush3.bf16.msra.mxu1 %v1073_v14 }
   0xc   :  { %14 = vsyncpa [#allocation3], 0  ;;  %v1074_v19 = vld [vmem:[%s1297_s3 + $0x10] sm:$0xff]   ;;  %v1075_v20 = vld [vmem:[%s1297_s3 + $0x18] sm:$0xff]   ;;  %vm190_vm3 = vcmask 523264   ;;  %vm303_vm4 = vcmask 261120  }
   0xd   :  { %996 = vmatprep.subr.bf16.mxu1 %v1074_v19  ;;  %v1076_v21 = vld [vmem:[%s1299_s5] sm:$0xff]   ;;  %v1077_v51 = vld [vmem:[%s1299_s5 + $0x8] sm:$0xff]   ;;  %v1078_v52 = vld [vmem:[%s1299_s5 + $0x10] sm:$0xff]   ;;  %s1111_s3 = smov [#allocation2]  }
   0xe   :  { %1008 = vmatprep.subr.bf16.mxu0 %v1076_v21  ;;  %v875_v22 = vld [vmem:[%s1296_s2] ss:$0 sm:$0xff]  ;;  %s864_s16 = sshll.u32 %s1111_s3, 4  ;;  %s865_s16 = int_to_ptr.vmem [resolvable:$true] %s864_s16 }
   0xf   :  { %997 = vmatpush3.bf16.msra.mxu1 %v1074_v19  ;;  %1009 = vmatpush3.bf16.msra.mxu0 %v1076_v21  ;;  %v880_v53 = vld [vmem:[%s1298_s4] ss:$0 sm:$0xff]  ;;  %p1091_p1 = scmp.lt.s32.totalorder %s865_s16, %s865_s16 }
  0x10   :  { %998 = vmatprep.subr.bf16.mxu1 %v1075_v20  ;;  %1010 = vmatprep.subr.bf16.mxu0 %v1077_v51  ;;  %v1080_v19 = vld [vmem:[%s1299_s5 + $0x20] sm:$0xff]  }
  0x11   :  { %989 = vmatmul.mubr.msk.bf16.gmra.mrb[4].mxu0 %vm54_vm2, %v47_v18  ;;  %v1079_v18 = vld [vmem:[%s1299_s5 + $0x18] sm:$0xff]  }
  0x13   :  { %999 = vmatpush3.bf16.msra.mxu1 %v1075_v20  ;;  %1011 = vmatpush3.bf16.msra.mxu0 %v1077_v51  ;;  %v889_v20 = vld [vmem:[%s1300_s6] ss:$0 sm:$0xff] }
  0x14   :  { %1020 = vmatprep.subr.bf16.mxu1 %v1078_v52  ;;  %1032 = vmatprep.subr.bf16.mxu0 %v1080_v19 }
  0xdc   :  { %v986_v23 = vpop.f32.mrb[0].mxu0 }
  0xdd   :  { %v117_v24 = vadd.f32 %v986_v23, %v875_v22  ;;  %v108_v25 = vpop.f32.mrb[1].mxu0 }
  0xde   :  { %v109_v26 = vadd.f32 %v875_v22, %v108_v25  ;;  %v987_v27 = vpop.f32.mrb[2].mxu0 }
  0xdf   :  { %v120_v28 = vadd.f32 %v987_v27, %v875_v22  ;;  %v111_v29 = vpop.f32.mrb[3].mxu0  ;;  %v141_v31 = vmax.f32 %v117_v24, 0.0 }
  0xe0   :  { %v112_v30 = vadd.f32 %v875_v22, %v111_v29  ;;  %v139_v33 = vmax.f32 %v109_v26, 0.0 }
  0xe1   :  { %v142_v32 = vmax.f32 %v120_v28, 0.0 }
  0xe2   :  { %v140_v34 = vmax.f32 %v112_v30, 0.0 }
  0xe3   :  { %v157_v35 = vpack.c.bf16 %v142_v32, %v141_v31 }
  0xe4   :  { %v990_v36 = vpop.f32.mrb[4].mxu0  ;;  %v156_v37 = vpack.c.bf16 %v140_v34, %v139_v33 }
  0xe5   :  { %v133_v38 = vadd.f32 %v990_v36, %v875_v22  ;;  %v124_v39 = vpop.f32.mrb[5].mxu0 }
  0xe6   :  { %v125_v40 = vadd.f32 %v875_v22, %v124_v39  ;;  %v991_v41 = vpop.f32.mrb[6].mxu0  ;;  %1000 = vmatprep.mubr.msk.bf16.mxu1 %vm190_vm3, %v156_v37 }
  0xe7   :  { %v136_v42 = vadd.f32 %v991_v41, %v875_v22  ;;  %v127_v43 = vpop.f32.mrb[7].mxu0  ;;  %1001 = vmatmul.mubr.msk.bf16.vlgmr.msra.gmra.mrb[0].mxu1 %vm190_vm3, %v157_v35  ;;  %v145_v45 = vmax.f32 %v133_v38, 0.0 }
  0xe8   :  { %v128_v44 = vadd.f32 %v875_v22, %v127_v43  ;;  %v143_v47 = vmax.f32 %v125_v40, 0.0  ;;  %1021 = vmatpush3.bf16.msra.mxu1 %v1078_v52 }
  0xe9   :  { %v146_v46 = vmax.f32 %v136_v42, 0.0  ;;  %1022 = vmatprep.subr.bf16.mxu1 %v1079_v18 }
  0xea   :  { %v144_v48 = vmax.f32 %v128_v44, 0.0 }
  0xeb   :  { %v159_v49 = vpack.c.bf16 %v146_v46, %v145_v45 }
  0xec   :  { %v158_v50 = vpack.c.bf16 %v144_v48, %v143_v47  ;;  %1023 = vmatpush3.bf16.msra.mxu1 %v1079_v18 }
  0xee   :  { %1004 = vmatprep.mubr.msk.bf16.mxu1 %vm190_vm3, %v158_v50 }
  0xef   :  { %1005 = vmatmul.mubr.msk.bf16.gmra.mrb[4].mxu1 %vm190_vm3, %v159_v49 }
 0x1ba   :  { %v1002_v54 = vpop.f32.mrb[0].mxu1 }
 0x1bb   :  { %v237_v55 = vpop.f32.mrb[1].mxu1  ;;  %v246_v58 = vadd.f32 %v1002_v54, %v880_v53 }
 0x1bc   :  { %v238_v56 = vadd.f32 %v880_v53, %v237_v55  ;;  %v1003_v57 = vpop.f32.mrb[2].mxu1 }
 0x1bd   :  { %v249_v59 = vadd.f32 %v1003_v57, %v880_v53  ;;  %v240_v60 = vpop.f32.mrb[3].mxu1  ;;  %v270_v1 = vmax.f32 %v246_v58, 0.0  ;;  %v1081_v57 = vld [vmem:[%s1299_s5 + $0x28] sm:$0xff]   ;;  %v1082_v58 = vld [vmem:[%s1299_s5 + $0x30] sm:$0xff]  }
 0x1be   :  { %v241_v61 = vadd.f32 %v880_v53, %v240_v60  ;;  %v268_v63 = vmax.f32 %v238_v56, 0.0  ;;  %1044 = vmatprep.subr.bf16.mxu1 %v1082_v58 }
 0x1bf   :  { %v271_v62 = vmax.f32 %v249_v59, 0.0  ;;  %v901_v59 = vld [vmem:[%s1300_s6 + $0x1] ss:$0 sm:$0xff] }
 0x1c0   :  { %v269_v0 = vmax.f32 %v241_v61, 0.0 }
 0x1c1   :  { %v282_v4 = vpack.c.bf16 %v271_v62, %v270_v1 }
 0x1c2   :  { %v281_v2 = vpack.c.bf16 %v269_v0, %v268_v63  ;;  %v1006_v3 = vpop.f32.mrb[4].mxu1 }
 0x1c3   :  { %v253_v5 = vpop.f32.mrb[5].mxu1  ;;  %v262_v8 = vadd.f32 %v1006_v3, %v880_v53 }
 0x1c4   :  { %v254_v6 = vadd.f32 %v880_v53, %v253_v5  ;;  %v1007_v7 = vpop.f32.mrb[6].mxu1  ;;  %1012 = vmatprep.mubr.msk.bf16.mxu0 %vm303_vm4, %v281_v2 }
 0x1c5   :  { %v265_v9 = vadd.f32 %v1007_v7, %v880_v53  ;;  %v256_v10 = vpop.f32.mrb[7].mxu1  ;;  %1013 = vmatmul.mubr.msk.bf16.vlgmr.msra.gmra.mrb[8].mxu0 %vm303_vm4, %v282_v4  ;;  %v274_v15 = vmax.f32 %v262_v8, 0.0 }
 0x1c6   :  { %v257_v11 = vadd.f32 %v880_v53, %v256_v10  ;;  %v272_v13 = vmax.f32 %v254_v6, 0.0  ;;  %1033 = vmatpush3.bf16.msra.mxu0 %v1080_v19 }
 0x1c7   :  { %v275_v12 = vmax.f32 %v265_v9, 0.0  ;;  %1034 = vmatprep.subr.bf16.mxu0 %v1081_v57 }
 0x1c8   :  { %v273_v14 = vmax.f32 %v257_v11, 0.0 }
 0x1c9   :  { %v284_v17 = vpack.c.bf16 %v275_v12, %v274_v15 }
 0x1ca   :  { %v283_v16 = vpack.c.bf16 %v273_v14, %v272_v13  ;;  %1035 = vmatpush3.bf16.msra.mxu0 %v1081_v57 }
 0x1cc   :  { %1016 = vmatprep.mubr.msk.bf16.mxu0 %vm303_vm4, %v283_v16 }
 0x1cd   :  { %1017 = vmatmul.mubr.msk.bf16.gmra.mrb[12].mxu0 %vm303_vm4, %v284_v17 }
 0x298   :  { %v1014_v21 = vpop.f32.mrb[8].mxu0 }
 0x299   :  { %v359_v22 = vadd.f32 %v1014_v21, %v889_v20  ;;  %v350_v23 = vpop.f32.mrb[9].mxu0 }
 0x29a   :  { %v351_v24 = vadd.f32 %v889_v20, %v350_v23  ;;  %v1015_v25 = vpop.f32.mrb[10].mxu0 }
 0x29b   :  { %v362_v26 = vadd.f32 %v1015_v25, %v889_v20  ;;  %v353_v27 = vpop.f32.mrb[11].mxu0  ;;  %v383_v30 = vmax.f32 %v359_v22, 0.0 }
 0x29c   :  { %v381_v28 = vmax.f32 %v351_v24, 0.0  ;;  %v354_v29 = vadd.f32 %v889_v20, %v353_v27 }
 0x29d   :  { %v384_v31 = vmax.f32 %v362_v26, 0.0  ;;  %v391_v37 = vadd.f32 %v383_v30, %v270_v1 }
 0x29e   :  { %v382_v32 = vmax.f32 %v354_v29, 0.0  ;;  %v389_v34 = vadd.f32 %v381_v28, %v268_v63 }
 0x29f   :  { %v392_v33 = vadd.f32 %v384_v31, %v271_v62 }
 0x2a0   :  { %v390_v35 = vadd.f32 %v382_v32, %v269_v0  ;;  %v1018_v36 = vpop.f32.mrb[12].mxu0  ;;  %v1083_v32 = vld [vmem:[%s1299_s5 + $0x38] sm:$0xff]  }
 0x2a1   :  { %v375_v38 = vadd.f32 %v1018_v36, %v889_v20  ;;  %v366_v39 = vpop.f32.mrb[13].mxu0  ;;  %v405_v43 = vpack.c.bf16 %v392_v33, %v391_v37 }
 0x2a2   :  { %v404_v40 = vpack.c.bf16 %v390_v35, %v389_v34  ;;  %v367_v41 = vadd.f32 %v889_v20, %v366_v39  ;;  %v1019_v42 = vpop.f32.mrb[14].mxu0 }
 0x2a3   :  { %v378_v44 = vadd.f32 %v1019_v42, %v889_v20  ;;  %v369_v45 = vpop.f32.mrb[15].mxu0  ;;  %v387_v48 = vmax.f32 %v375_v38, 0.0 }
 0x2a4   :  { %v385_v46 = vmax.f32 %v367_v41, 0.0  ;;  %v370_v47 = vadd.f32 %v889_v20, %v369_v45  ;;  %1024 = vmatprep.mubr.msk.bf16.mxu1 %vm303_vm4, %v404_v40 }
 0x2a5   :  { %v388_v49 = vmax.f32 %v378_v44, 0.0  ;;  %1025 = vmatmul.mubr.msk.bf16.vlgmr.msra.gmra.mrb[8].mxu1 %vm303_vm4, %v405_v43  ;;  %v395_v54 = vadd.f32 %v387_v48, %v274_v15 }
 0x2a6   :  { %v386_v50 = vmax.f32 %v370_v47, 0.0  ;;  %v393_v52 = vadd.f32 %v385_v46, %v272_v13  ;;  %1045 = vmatpush3.bf16.msra.mxu1 %v1082_v58 }
 0x2a7   :  { %v396_v51 = vadd.f32 %v388_v49, %v275_v12  ;;  %1046 = vmatprep.subr.bf16.mxu1 %v1083_v32 }
 0x2a8   :  { %v394_v53 = vadd.f32 %v386_v50, %v273_v14 }
 0x2a9   :  { %v407_v56 = vpack.c.bf16 %v396_v51, %v395_v54 }
 0x2aa   :  { %v406_v55 = vpack.c.bf16 %v394_v53, %v393_v52  ;;  %1047 = vmatpush3.bf16.msra.mxu1 %v1083_v32 }
 0x2ac   :  { %1028 = vmatprep.mubr.msk.bf16.mxu1 %vm303_vm4, %v406_v55 }
 0x2ad   :  { %1029 = vmatmul.mubr.msk.bf16.gmra.mrb[12].mxu1 %vm303_vm4, %v407_v56 }
 0x378   :  { %v1026_v60 = vpop.f32.mrb[8].mxu1 }
 0x379   :  { %v481_v61 = vadd.f32 %v1026_v60, %v901_v59  ;;  %v472_v62 = vpop.f32.mrb[9].mxu1 }
 0x37a   :  { %v473_v63 = vadd.f32 %v901_v59, %v472_v62  ;;  %v1027_v0 = vpop.f32.mrb[10].mxu1 }
 0x37b   :  { %v505_v1 = vmax.f32 %v481_v61, 0.0  ;;  %v484_v2 = vadd.f32 %v1027_v0, %v901_v59  ;;  %v475_v3 = vpop.f32.mrb[11].mxu1  ;;  %v925_v0 = vld [vmem:[%s1300_s6 + $0x3] ss:$0 sm:$0xff] }
 0x37c   :  { %v503_v4 = vmax.f32 %v473_v63, 0.0  ;;  %v476_v5 = vadd.f32 %v901_v59, %v475_v3  ;;  %v1085_v63 = vld [vmem:[%s1301_s7 + $0x8] sm:$0xff]  }
 0x37d   :  { %v506_v6 = vmax.f32 %v484_v2, 0.0  ;;  %v513_v8 = vadd.f32 %v505_v1, %v391_v37 }
 0x37e   :  { %v504_v7 = vmax.f32 %v476_v5, 0.0  ;;  %v511_v10 = vadd.f32 %v503_v4, %v389_v34  ;;  %v913_v34 = vld [vmem:[%s1300_s6 + $0x2] ss:$0 sm:$0xff] }
 0x37f   :  { %v514_v9 = vadd.f32 %v506_v6, %v392_v33  ;;  %v1084_v33 = vld [vmem:[%s1301_s7] sm:$0xff]  }
 0x380   :  { %v512_v11 = vadd.f32 %v504_v7, %v390_v35  ;;  %v1030_v12 = vpop.f32.mrb[12].mxu1  ;;  %1056 = vmatprep.subr.bf16.mxu0 %v1084_v33 }
 0x381   :  { %v527_v13 = vpack.c.bf16 %v514_v9, %v513_v8  ;;  %v497_v14 = vadd.f32 %v1030_v12, %v901_v59  ;;  %v488_v15 = vpop.f32.mrb[13].mxu1 }
 0x382   :  { %v526_v16 = vpack.c.bf16 %v512_v11, %v511_v10  ;;  %v489_v17 = vadd.f32 %v901_v59, %v488_v15  ;;  %v1031_v18 = vpop.f32.mrb[14].mxu1 }
 0x383   :  { %v509_v19 = vmax.f32 %v497_v14, 0.0  ;;  %v500_v20 = vadd.f32 %v1031_v18, %v901_v59  ;;  %v491_v21 = vpop.f32.mrb[15].mxu1 }
 0x384   :  { %v507_v22 = vmax.f32 %v489_v17, 0.0  ;;  %v492_v23 = vadd.f32 %v901_v59, %v491_v21  ;;  %1036 = vmatprep.mubr.msk.bf16.mxu0 %vm303_vm4, %v526_v16 }
 0x385   :  { %v510_v24 = vmax.f32 %v500_v20, 0.0  ;;  %1037 = vmatmul.mubr.msk.bf16.vlgmr.msra.gmra.mrb[16].mxu0 %vm303_vm4, %v527_v13  ;;  %v517_v26 = vadd.f32 %v509_v19, %v395_v54 }
 0x386   :  { %v508_v25 = vmax.f32 %v492_v23, 0.0  ;;  %v515_v28 = vadd.f32 %v507_v22, %v393_v52  ;;  %1057 = vmatpush3.bf16.msra.mxu0 %v1084_v33 }
 0x387   :  { %v518_v27 = vadd.f32 %v510_v24, %v396_v51  ;;  %1058 = vmatprep.subr.bf16.mxu0 %v1085_v63 }
 0x388   :  { %v516_v29 = vadd.f32 %v508_v25, %v394_v53 }
 0x389   :  { %v529_v30 = vpack.c.bf16 %v518_v27, %v517_v26 }
 0x38a   :  { %v528_v31 = vpack.c.bf16 %v516_v29, %v515_v28  ;;  %1059 = vmatpush3.bf16.msra.mxu0 %v1085_v63  ;;  %v932_v29 = vld [vmem:[%s1302_s8] ss:$0 sm:$0xff]  ;;  %s1086_s8 = scalar_lea.vmem %s865_s16, 1024 }
 0x38b   :  { %p1087_p0 = scmp.ne.s32.totalorder %s865_s16, %s1086_s8  ;;  %p1092_p2 = scmp.lt.s32.totalorder %s1086_s8, %s1086_s8 }
 0x38c   :  { %1040 = vmatprep.mubr.msk.bf16.mxu0 %vm303_vm4, %v528_v31 }
 0x38d   :  { %1041 = vmatmul.mubr.msk.bf16.gmra.mrb[20].mxu0 %vm303_vm4, %v529_v30  ;;  %p1093_p3 = por %p1092_p2, %p1091_p1 }
 0x38f   :  { %p1094_p4 = pnand %p1093_p3, %p1087_p0 }
 0x458   :  { %v1038_v35 = vpop.f32.mrb[16].mxu0 }
 0x459   :  { %v603_v36 = vadd.f32 %v1038_v35, %v913_v34  ;;  %v594_v37 = vpop.f32.mrb[17].mxu0 }
 0x45a   :  { %v595_v38 = vadd.f32 %v913_v34, %v594_v37  ;;  %v1039_v39 = vpop.f32.mrb[18].mxu0 }
 0x45b   :  { %v606_v40 = vadd.f32 %v1039_v39, %v913_v34  ;;  %v597_v41 = vpop.f32.mrb[19].mxu0  ;;  %v627_v43 = vmax.f32 %v603_v36, 0.0 }
 0x45c   :  { %v598_v42 = vadd.f32 %v913_v34, %v597_v41  ;;  %v625_v45 = vmax.f32 %v595_v38, 0.0 }
 0x45d   :  { %v628_v44 = vmax.f32 %v606_v40, 0.0 }
 0x45e   :  { %v626_v46 = vmax.f32 %v598_v42, 0.0 }
 0x45f   :  { %v641_v47 = vpack.c.bf16 %v628_v44, %v627_v43 }
 0x460   :  { %v640_v48 = vpack.c.bf16 %v626_v46, %v625_v45  ;;  %v1042_v49 = vpop.f32.mrb[20].mxu0 }
 0x461   :  { %v619_v50 = vadd.f32 %v1042_v49, %v913_v34  ;;  %v610_v51 = vpop.f32.mrb[21].mxu0 }
 0x462   :  { %v611_v52 = vadd.f32 %v913_v34, %v610_v51  ;;  %v1043_v53 = vpop.f32.mrb[22].mxu0  ;;  %1048 = vmatprep.mubr.msk.bf16.mxu1 %vm303_vm4, %v640_v48 }
 0x463   :  { %v622_v54 = vadd.f32 %v1043_v53, %v913_v34  ;;  %v613_v55 = vpop.f32.mrb[23].mxu0  ;;  %1049 = vmatmul.mubr.msk.bf16.vlgmr.msra.gmra.mrb[16].mxu1 %vm303_vm4, %v641_v47  ;;  %v631_v57 = vmax.f32 %v619_v50, 0.0 }
 0x464   :  { %v614_v56 = vadd.f32 %v913_v34, %v613_v55  ;;  %v629_v59 = vmax.f32 %v611_v52, 0.0 }
 0x465   :  { %v632_v58 = vmax.f32 %v622_v54, 0.0 }
 0x466   :  { %v630_v60 = vmax.f32 %v614_v56, 0.0 }
 0x467   :  { %v643_v61 = vpack.c.bf16 %v632_v58, %v631_v57 }
 0x468   :  { %v642_v62 = vpack.c.bf16 %v630_v60, %v629_v59 }
 0x46a   :  { %1052 = vmatprep.mubr.msk.bf16.mxu1 %vm303_vm4, %v642_v62 }
 0x46b   :  { %1053 = vmatmul.mubr.msk.bf16.gmra.mrb[20].mxu1 %vm303_vm4, %v643_v61 }
 0x536   :  { %v1050_v1 = vpop.f32.mrb[16].mxu1 }
 0x537   :  { %v717_v2 = vadd.f32 %v1050_v1, %v925_v0  ;;  %v708_v3 = vpop.f32.mrb[17].mxu1 }
 0x538   :  { %v709_v4 = vadd.f32 %v925_v0, %v708_v3  ;;  %v1051_v5 = vpop.f32.mrb[18].mxu1 }
 0x539   :  { %v720_v6 = vadd.f32 %v1051_v5, %v925_v0  ;;  %v711_v7 = vpop.f32.mrb[19].mxu1  ;;  %v741_v9 = vmax.f32 %v717_v2, 0.0 }
 0x53a   :  { %v712_v8 = vadd.f32 %v925_v0, %v711_v7  ;;  %v739_v11 = vmax.f32 %v709_v4, 0.0 }
 0x53b   :  { %v742_v10 = vmax.f32 %v720_v6, 0.0 }
 0x53c   :  { %v740_v12 = vmax.f32 %v712_v8, 0.0 }
 0x53d   :  { %v753_v13 = vpack.c.bf16 %v742_v10, %v741_v9 }
 0x53e   :  { %v752_v14 = vpack.c.bf16 %v740_v12, %v739_v11  ;;  %v1054_v15 = vpop.f32.mrb[20].mxu1 }
 0x53f   :  { %v733_v16 = vadd.f32 %v1054_v15, %v925_v0  ;;  %v724_v17 = vpop.f32.mrb[21].mxu1 }
 0x540   :  { %v725_v18 = vadd.f32 %v925_v0, %v724_v17  ;;  %v1055_v19 = vpop.f32.mrb[22].mxu1  ;;  %1060 = vmatprep.mubr.msk.bf16.mxu0 %vm303_vm4, %v752_v14 }
 0x541   :  { %v736_v20 = vadd.f32 %v1055_v19, %v925_v0  ;;  %v727_v21 = vpop.f32.mrb[23].mxu1  ;;  %1061 = vmatmul.mubr.msk.bf16.vlgmr.msra.gmra.mrb[24].mxu0 %vm303_vm4, %v753_v13  ;;  %v745_v23 = vmax.f32 %v733_v16, 0.0 }
 0x542   :  { %v728_v22 = vadd.f32 %v925_v0, %v727_v21  ;;  %v743_v25 = vmax.f32 %v725_v18, 0.0 }
 0x543   :  { %v746_v24 = vmax.f32 %v736_v20, 0.0 }
 0x544   :  { %v744_v26 = vmax.f32 %v728_v22, 0.0 }
 0x545   :  { %v755_v27 = vpack.c.bf16 %v746_v24, %v745_v23 }
 0x546   :  { %v754_v28 = vpack.c.bf16 %v744_v26, %v743_v25 }
 0x548   :  { %1064 = vmatprep.mubr.msk.bf16.mxu0 %vm303_vm4, %v754_v28 }
 0x549   :  { %1065 = vmatmul.mubr.msk.bf16.gmra.mrb[28].mxu0 %vm303_vm4, %v755_v27 }
 0x614   :  { %v1062_v30 = vpop.f32.mrb[24].mxu0 }
 0x615   :  { %v829_v31 = vadd.f32 %v1062_v30, %v932_v29  ;;  %v820_v32 = vpop.f32.mrb[25].mxu0 }
 0x616   :  { %v821_v33 = vadd.f32 %v932_v29, %v820_v32  ;;  %v1063_v34 = vpop.f32.mrb[26].mxu0 }
 0x617   :  { %853 = vst [vmem:[#allocation2 + $0x10] sm:$0xff] %v829_v31  ;;  %v832_v35 = vadd.f32 %v1063_v34, %v932_v29  ;;  %v823_v36 = vpop.f32.mrb[27].mxu0 }
 0x618   :  { %851 = vst [vmem:[#allocation2] sm:$0xff] %v821_v33  ;;  %v824_v37 = vadd.f32 %v932_v29, %v823_v36 }
 0x619   :  { %854 = vst [vmem:[#allocation2 + $0x18] sm:$0xff] %v832_v35 }
 0x61a   :  { %852 = vst [vmem:[#allocation2 + $0x8] sm:$0xff] %v824_v37 }
 0x61c   :  { %v1066_v38 = vpop.f32.mrb[28].mxu0 }
 0x61d   :  { %v845_v39 = vadd.f32 %v1066_v38, %v932_v29  ;;  %v836_v40 = vpop.f32.mrb[29].mxu0 }
 0x61e   :  { %v837_v41 = vadd.f32 %v932_v29, %v836_v40  ;;  %v1067_v42 = vpop.f32.mrb[30].mxu0 }
 0x61f   :  { %857 = vst [vmem:[#allocation2 + $0x30] sm:$0xff] %v845_v39  ;;  %v848_v43 = vadd.f32 %v1067_v42, %v932_v29  ;;  %v839_v44 = vpop.f32.mrb[31].mxu0 }
 0x620   :  { %855 = vst [vmem:[#allocation2 + $0x20] sm:$0xff] %v837_v41  ;;  %v840_v45 = vadd.f32 %v932_v29, %v839_v44 }
 0x621   :  { %858 = vst [vmem:[#allocation2 + $0x38] sm:$0xff] %v848_v43 }
 0x622   :  { %856 = vst [vmem:[#allocation2 + $0x28] sm:$0xff] %v840_v45 }
 0x623   :  { %1097 = shalt.err (!%p1094_p4)
}
 0x624   :  { %s1098_s18 = scalar_lea.hbm %s1303_s9, 1024 }
 0x625   :  { %p1099_p5 = scmp.ne.s32.totalorder %s1303_s9, %s1098_s18  ;;  %p1102_p6 = scmp.lt.u32.totalorder %s1098_s18, %s1303_s9 }
 0x627   :  { %p1104_p7 = pnand %p1102_p6, %p1099_p5 }
 0x629   :  { %1107 = shalt.err (!%p1104_p7)
}
 0x62a   :  { %s1112_s22 = smov 128   ;;  %s1113_s23 = smov 8  }
 0x62b   :  { %870 = dma.vmem_to_hbm [thread:$0]  %s865_s16, 1024, %s1303_s9, [#allocation3], %s1112_s22, %s1112_s22, %s1113_s23  }
 0x62c   :  { %1108 = dma.done.wait [#allocation3], 1024  }
 0x62d   :  { %1109 = vsyncadd [#allocation3], 4294966272 }
 0x62e   :  { %874 = vsyncpa [#allocation3], 1 }

</bundles_post_ra>
